<compile_context>
chip_gen: v7x
topology: tpu7x:2x2x1
jax: 0.10.0
libtpu: 0.0.40
codegen_flags: <defaults>
</compile_context>

<pallas_src>
import functools

import jax
import jax.numpy as jnp
from jax import lax
from jax.experimental import pallas as pl
from jax.experimental.pallas import tpu as pltpu


NEG_INF = -1e9


# ----------------------------------------------------------------------------
# Fused Pallas kernel: one attention over all utilities of the whole batch
# ----------------------------------------------------------------------------
def _fused_attn_kernel(x_ref, bias_ref, w_ref, o_ref):
    # x_ref    : (BL, Hp)    bf16  flattened (batch, utility-seq) rows
    # bias_ref : (BL, BL)    f32   additive bias (cross-batch / same-utility /
    #                              padded keys are -1e9, else 0)
    # w_ref    : (4, Hp, Hp) bf16  packed [wq*scale, wk, wv, wo]
    # o_ref    : (BL, Hp)    f32   attended + residual output slab
    x = x_ref[...]
    bias = bias_ref[...]
    wq = w_ref[0]
    wk = w_ref[1]
    wv = w_ref[2]
    wo = w_ref[3]

    def proj(a, w):
        return jnp.dot(a, w, preferred_element_type=jnp.float32)

    q = proj(x, wq).astype(jnp.bfloat16)                       # (BL, Hp)
    k = proj(x, wk).astype(jnp.bfloat16)                       # (BL, Hp)
    v = proj(x, wv).astype(jnp.bfloat16)                       # (BL, Hp)

    # QK^T without materialising a transpose: contract over H on both.
    s = lax.dot_general(q, k, (((1,), (1,)), ((), ())),
                        preferred_element_type=jnp.float32)    # (BL, BL)
    s = s + bias

    m = jnp.max(s, axis=-1, keepdims=True)
    p = jnp.exp(s - m)
    denom = jnp.sum(p, axis=-1, keepdims=True)
    p = p * pl.reciprocal(denom, approx=True)                  # EUP divide

    ctx = jnp.dot(p.astype(jnp.bfloat16), v,
                  preferred_element_type=jnp.float32)          # (BL, Hp)
    out = x.astype(jnp.float32) + jnp.dot(
        ctx.astype(jnp.bfloat16), wo, preferred_element_type=jnp.float32)
    o_ref[...] = out.astype(o_ref.dtype)


# ----------------------------------------------------------------------------
# Wrapper: padding, bias construction, single fused pallas_call
# ----------------------------------------------------------------------------
def _fused_forward(img, ques, hist, img_mask, ques_mask, hist_mask, w_packed):
    B, K, H = img.shape
    _, N, _ = ques.shape
    _, T, _ = hist.shape
    Hp = w_packed.shape[-1]
    Ltot = K + N + T
    BL = B * Ltot
    pad = Hp - H

    # Lane-dense bf16 activation slab, batch flattened into the row axis.
    x = jnp.concatenate([img, ques, hist], axis=1)                 # (B, Ltot, H)
    x = jnp.pad(x, ((0, 0), (0, 0), (0, pad))).astype(jnp.bfloat16)
    x = x.reshape(BL, Hp)

    # Single (BL, BL) additive bias: a key is attendable iff it belongs to the
    # SAME batch element, a DIFFERENT utility, and is not padded.
    mask_all = jnp.concatenate([img_mask, ques_mask, hist_mask], axis=1)
    key_valid = (mask_all > 0).reshape(BL)                         # (BL,)
    util_id = jnp.concatenate([
        jnp.zeros((K,), jnp.int32),
        jnp.ones((N,), jnp.int32),
        jnp.full((T,), 2, jnp.int32)])                             # (Ltot,)
    util_flat = jnp.tile(util_id, B)                               # (BL,)
    batch_flat = jnp.repeat(jnp.arange(B, dtype=jnp.int32), Ltot)  # (BL,)
    allowed = ((batch_flat[:, None] == batch_flat[None, :])
               & (util_flat[:, None] != util_flat[None, :])
               & key_valid[None, :])
    bias = jnp.where(allowed, 0.0, jnp.float32(NEG_INF))           # (BL, BL)

    out = pl.pallas_call(
        _fused_attn_kernel,
        out_shape=jax.ShapeDtypeStruct((BL, Hp), jnp.float32),
        grid=(1,),
        in_specs=[
            pl.BlockSpec((BL, Hp), lambda i: (0, 0)),
            pl.BlockSpec((BL, BL), lambda i: (0, 0)),
            pl.BlockSpec((4, Hp, Hp), lambda i: (0, 0, 0)),
        ],
        out_specs=pl.BlockSpec((BL, Hp), lambda i: (0, 0)),
        compiler_params=pltpu.CompilerParams(
            dimension_semantics=("arbitrary",)),
    )(x, bias, w_packed)

    out = out.reshape(B, Ltot, Hp)
    im_o = out[:, :K, :H]
    qe_o = out[:, K:K + N, :H]
    hi_o = out[:, K + N:, :H]
    return im_o, qe_o, hi_o


_fused_forward_jit = jax.jit(_fused_forward)


# ----------------------------------------------------------------------------
# attn_encoder: each utility attends over the concatenation of the other two
# ----------------------------------------------------------------------------
class AttnEncoder:
    def __init__(self, hidden_size, key):
        ks = jax.random.split(key, 4)
        init_scale = 1.0 / jnp.sqrt(jnp.float32(hidden_size))
        self.hidden_size = hidden_size
        self.wq = jax.random.normal(ks[0], (hidden_size, hidden_size),
                                    jnp.float32) * init_scale
        self.wk = jax.random.normal(ks[1], (hidden_size, hidden_size),
                                    jnp.float32) * init_scale
        self.wv = jax.random.normal(ks[2], (hidden_size, hidden_size),
                                    jnp.float32) * init_scale
        self.wo = jax.random.normal(ks[3], (hidden_size, hidden_size),
                                    jnp.float32) * init_scale

        hp = max(128, ((hidden_size + 127) // 128) * 128)  # lane-dense hidden

        def pad_w(w):
            return jnp.pad(w, ((0, hp - hidden_size), (0, hp - hidden_size)))

        # Packed, zero-padded, bf16 weights; 1/sqrt(H) attention scale folded
        # into wq once at init (no per-step score multiply in the kernel).
        attn_scale = 1.0 / float(hidden_size) ** 0.5
        self.w_packed = jnp.stack(
            [pad_w(self.wq * attn_scale), pad_w(self.wk),
             pad_w(self.wv), pad_w(self.wo)]
        ).astype(jnp.bfloat16)

    def __call__(self, batch_input):
        img, ques, hist, img_mask, ques_mask, hist_mask = batch_input
        im, qe, hi = _fused_forward_jit(img, ques, hist,
                                        img_mask, ques_mask, hist_mask,
                                        self.w_packed)
        return im, qe, hi, img_mask, ques_mask, hist_mask


# ----------------------------------------------------------------------------
# Encoder: mirrors the PyTorch module's forward
# ----------------------------------------------------------------------------
class Encoder:
    def __init__(self, config, text_encoder, img_encoder, attn_encoder):
        self.config = config
        self.text_encoder = text_encoder      # unused in reference forward
        self.img_encoder = img_encoder        # unused in reference forward
        self.attn_encoder = attn_encoder

    def forward(self, batch, test_mode=False):
        # In the reference, im/qe/hi and masks come from a pickle lookup keyed
        # by img_ids; here they are pre-populated deterministic arrays.
        hist = batch['hi']
        ques = batch['qe']
        img = batch['im']
        hist_mask = batch['mask_hi']
        ques_mask = batch['mask_qe']
        img_mask = batch['mask_im']
        batch_input = (img, ques, hist, img_mask, ques_mask, hist_mask)
        return self.attn_encoder(batch_input)


# ----------------------------------------------------------------------------
# Pure-JAX (f32) reference for validation
# ----------------------------------------------------------------------------
def _ref_cross_attn(x, kv, kv_mask, wq, wk, wv, wo):
    q = jnp.einsum('blh,hd->bld', x, wq)
    k = jnp.einsum('blh,hd->bld', kv, wk)
    v = jnp.einsum('blh,hd->bld', kv, wv)
    s = jnp.einsum('bqd,bkd->bqk', q, k) / jnp.sqrt(jnp.float32(x.shape[-1]))
    s = s + jnp.where(kv_mask[:, None, :] > 0, 0.0, -1e9)
    p = jax.nn.softmax(s, axis=-1)
    ctx = jnp.einsum('bqk,bkd->bqd', p, v)
    return x + jnp.einsum('bqd,dh->bqh', ctx, wo)


if __name__ == "__main__":
    B, NH = 2, 1          # batch_size x NH
    K, N, T = 8, 8, 8     # num_proposals, max question length, rounds
    H = 32                # hidden size
    BNH = B * NH

    key = jax.random.PRNGKey(0)
    k_im, k_qe, k_hi, k_w = jax.random.split(key, 4)

    im = jax.random.normal(k_im, (BNH, K, H), jnp.float32)
    qe = jax.random.normal(k_qe, (BNH, N, H), jnp.float32)
    hi = jax.random.normal(k_hi, (BNH, T, H), jnp.float32)

    # masks: 1 = valid, 0 = pad (pad out the tail of each utility)
    mask_im = jnp.concatenate(
        [jnp.ones((BNH, K - 2), jnp.int32), jnp.zeros((BNH, 2), jnp.int32)], axis=1)
    mask_qe = jnp.concatenate(
        [jnp.ones((BNH, N - 3), jnp.int32), jnp.zeros((BNH, 3), jnp.int32)], axis=1)
    mask_hi = jnp.ones((BNH, T), jnp.int32)

    attn_enc = AttnEncoder(H, k_w)
    encoder = Encoder(config={}, text_encoder=None, img_encoder=None,
                      attn_encoder=attn_enc)

    batch = {
        'im': im, 'qe': qe, 'hi': hi,
        'mask_im': mask_im, 'mask_qe': mask_qe, 'mask_hi': mask_hi,
        'img_ids': jnp.arange(BNH, dtype=jnp.int32),
    }

    out = encoder.forward(batch)
    out = jax.block_until_ready(out)
    im_o, qe_o, hi_o, m_im, m_qe, m_hi = out

    # Validate against the pure-f32 JAX reference. The kernel runs bf16 inputs
    # with f32 accumulation, so tolerances are set for bf16 (~1% relative).
    w = (attn_enc.wq, attn_enc.wk, attn_enc.wv, attn_enc.wo)
    im_ref = _ref_cross_attn(im, jnp.concatenate([qe, hi], 1),
                             jnp.concatenate([mask_qe, mask_hi], 1), *w)
    qe_ref = _ref_cross_attn(qe, jnp.concatenate([im, hi], 1),
                             jnp.concatenate([mask_im, mask_hi], 1), *w)
    hi_ref = _ref_cross_attn(hi, jnp.concatenate([im, qe], 1),
                             jnp.concatenate([mask_im, mask_qe], 1), *w)

    assert im_o.shape == (BNH, K, H) and qe_o.shape == (BNH, N, H)
    assert hi_o.shape == (BNH, T, H)
    assert jnp.allclose(im_o, im_ref, atol=5e-2, rtol=5e-2)
    assert jnp.allclose(qe_o, qe_ref, atol=5e-2, rtol=5e-2)
    assert jnp.allclose(hi_o, hi_ref, atol=5e-2, rtol=5e-2)
    assert jnp.array_equal(m_im, mask_im) and jnp.array_equal(m_qe, mask_qe)
    assert jnp.array_equal(m_hi, mask_hi)

    print("KERNEL_OK")
</pallas_src>

<mosaic_0001>
module attributes {stable_mosaic.version = 11 : i64} {
  func.func @_fused_attn_kernel(%arg0: i32, %arg1: memref<48x128xbf16, #tpu.memory_space<vmem>>, %arg2: memref<48x48xf32, #tpu.memory_space<vmem>>, %arg3: memref<4x128x128xbf16, #tpu.memory_space<vmem>>, %arg4: memref<48x128xf32, #tpu.memory_space<vmem>>) attributes {dimension_semantics = [#tpu.dimension_semantics<arbitrary>], iteration_bounds = array<i64: 1>, scalar_prefetch = 0 : i64, scratch_operands = 0 : i64, tpu.core_type = #tpu.core_type<tc>, window_params = [{pipeline_mode = #tpu.pipeline_mode<synchronous>, transform_indices = @transform_0, window_bounds = array<i64: 48, 128>}, {pipeline_mode = #tpu.pipeline_mode<synchronous>, transform_indices = @transform_1, window_bounds = array<i64: 48, 48>}, {pipeline_mode = #tpu.pipeline_mode<synchronous>, transform_indices = @transform_2, window_bounds = array<i64: 4, 128, 128>}, {pipeline_mode = #tpu.pipeline_mode<synchronous>, transform_indices = @transform_3, window_bounds = array<i64: 48, 128>}]} {
    %c0 = arith.constant 0 : index
    %c0_0 = arith.constant 0 : index
    %0 = vector.load %arg1[%c0, %c0_0] : memref<48x128xbf16, #tpu.memory_space<vmem>>, vector<48x128xbf16>
    %c0_1 = arith.constant 0 : index
    %c0_2 = arith.constant 0 : index
    %1 = vector.load %arg2[%c0_1, %c0_2] : memref<48x48xf32, #tpu.memory_space<vmem>>, vector<48x48xf32>
    %c0_3 = arith.constant 0 : index
    %c0_4 = arith.constant 0 : index
    %c0_5 = arith.constant 0 : index
    %2 = vector.load %arg3[%c0_3, %c0_4, %c0_5] : memref<4x128x128xbf16, #tpu.memory_space<vmem>>, vector<1x128x128xbf16>
    %3 = vector.shape_cast %2 : vector<1x128x128xbf16> to vector<128x128xbf16>
    %c1 = arith.constant 1 : index
    %c0_6 = arith.constant 0 : index
    %c0_7 = arith.constant 0 : index
    %4 = vector.load %arg3[%c1, %c0_6, %c0_7] : memref<4x128x128xbf16, #tpu.memory_space<vmem>>, vector<1x128x128xbf16>
    %5 = vector.shape_cast %4 : vector<1x128x128xbf16> to vector<128x128xbf16>
    %c2 = arith.constant 2 : index
    %c0_8 = arith.constant 0 : index
    %c0_9 = arith.constant 0 : index
    %6 = vector.load %arg3[%c2, %c0_8, %c0_9] : memref<4x128x128xbf16, #tpu.memory_space<vmem>>, vector<1x128x128xbf16>
    %7 = vector.shape_cast %6 : vector<1x128x128xbf16> to vector<128x128xbf16>
    %c3 = arith.constant 3 : index
    %c0_10 = arith.constant 0 : index
    %c0_11 = arith.constant 0 : index
    %8 = vector.load %arg3[%c3, %c0_10, %c0_11] : memref<4x128x128xbf16, #tpu.memory_space<vmem>>, vector<1x128x128xbf16>
    %9 = vector.shape_cast %8 : vector<1x128x128xbf16> to vector<128x128xbf16>
    %cst = arith.constant dense<0.000000e+00> : vector<48x128xf32>
    %10 = tpu.matmul %0, %3, %cst {dimension_numbers = #tpu.dot_dimension_numbers<[1], [0], [0], [1], [0, 0, 1, 1], [], []>} : vector<48x128xbf16>, vector<128x128xbf16>, vector<48x128xf32> -> vector<48x128xf32>
    %11 = arith.truncf %10 : vector<48x128xf32> to vector<48x128xbf16>
    %cst_12 = arith.constant dense<0.000000e+00> : vector<48x128xf32>
    %12 = tpu.matmul %0, %5, %cst_12 {dimension_numbers = #tpu.dot_dimension_numbers<[1], [0], [0], [1], [0, 0, 1, 1], [], []>} : vector<48x128xbf16>, vector<128x128xbf16>, vector<48x128xf32> -> vector<48x128xf32>
    %13 = arith.truncf %12 : vector<48x128xf32> to vector<48x128xbf16>
    %cst_13 = arith.constant dense<0.000000e+00> : vector<48x128xf32>
    %14 = tpu.matmul %0, %7, %cst_13 {dimension_numbers = #tpu.dot_dimension_numbers<[1], [0], [0], [1], [0, 0, 1, 1], [], []>} : vector<48x128xbf16>, vector<128x128xbf16>, vector<48x128xf32> -> vector<48x128xf32>
    %15 = arith.truncf %14 : vector<48x128xf32> to vector<48x128xbf16>
    %cst_14 = arith.constant dense<0.000000e+00> : vector<48x48xf32>
    %16 = tpu.matmul %11, %13, %cst_14 {dimension_numbers = #tpu.dot_dimension_numbers<[1], [1], [0], [0], [0, 0, 1, 0], [], []>} : vector<48x128xbf16>, vector<48x128xbf16>, vector<48x48xf32> -> vector<48x48xf32>
    %17 = arith.addf %16, %1 : vector<48x48xf32>
    %cst_15 = arith.constant dense<0xFF800000> : vector<48xf32>
    %18 = vector.multi_reduction <maximumf>, %17, %cst_15 [1] : vector<48x48xf32> to vector<48xf32>
    %19 = vector.shape_cast %18 : vector<48xf32> to vector<48x1xf32>
    %20 = vector.broadcast %19 : vector<48x1xf32> to vector<48x48xf32>
    %21 = arith.subf %17, %20 : vector<48x48xf32>
    %22 = math.exp %21 : vector<48x48xf32>
    %cst_16 = arith.constant dense<0.000000e+00> : vector<48xf32>
    %23 = vector.multi_reduction <add>, %22, %cst_16 [1] : vector<48x48xf32> to vector<48xf32>
    %24 = vector.shape_cast %23 : vector<48xf32> to vector<48x1xf32>
    %25 = tpu.reciprocal %24 {approx = true} : vector<48x1xf32> -> vector<48x1xf32>
    %26 = vector.broadcast %25 : vector<48x1xf32> to vector<48x48xf32>
    %27 = arith.mulf %22, %26 : vector<48x48xf32>
    %28 = arith.truncf %27 : vector<48x48xf32> to vector<48x48xbf16>
    %cst_17 = arith.constant dense<0.000000e+00> : vector<48x128xf32>
    %29 = tpu.matmul %28, %15, %cst_17 {dimension_numbers = #tpu.dot_dimension_numbers<[1], [0], [0], [1], [0, 0, 1, 1], [], []>} : vector<48x48xbf16>, vector<48x128xbf16>, vector<48x128xf32> -> vector<48x128xf32>
    %30 = arith.extf %0 : vector<48x128xbf16> to vector<48x128xf32>
    %31 = arith.truncf %29 : vector<48x128xf32> to vector<48x128xbf16>
    %cst_18 = arith.constant dense<0.000000e+00> : vector<48x128xf32>
    %32 = tpu.matmul %31, %9, %cst_18 {dimension_numbers = #tpu.dot_dimension_numbers<[1], [0], [0], [1], [0, 0, 1, 1], [], []>} : vector<48x128xbf16>, vector<128x128xbf16>, vector<48x128xf32> -> vector<48x128xf32>
    %33 = arith.addf %30, %32 : vector<48x128xf32>
    %c0_19 = arith.constant 0 : index
    %c0_20 = arith.constant 0 : index
    %34 = vector.load %arg4[%c0_19, %c0_20] : memref<48x128xf32, #tpu.memory_space<vmem>>, vector<48x128xf32>
    tpu.vector_store %arg4[%c0_19, %c0_20], %33 {strides = array<i32>} : memref<48x128xf32, #tpu.memory_space<vmem>>, vector<48x128xf32>,
    return
  }
  func.func @transform_0(%arg0: i32) -> (i32, i32) {
    %c0_i32 = arith.constant 0 : i32
    %c0_i32_0 = arith.constant 0 : i32
    %c0_i32_1 = arith.constant 0 : i32
    return %c0_i32, %c0_i32_0 : i32, i32
  }
  func.func @transform_1(%arg0: i32) -> (i32, i32) {
    %c0_i32 = arith.constant 0 : i32
    %c0_i32_0 = arith.constant 0 : i32
    %c0_i32_1 = arith.constant 0 : i32
    return %c0_i32, %c0_i32_0 : i32, i32
  }
  func.func @transform_2(%arg0: i32) -> (i32, i32, i32) {
    %c0_i32 = arith.constant 0 : i32
    %c0_i32_0 = arith.constant 0 : i32
    %c0_i32_1 = arith.constant 0 : i32
    %c0_i32_2 = arith.constant 0 : i32
    return %c0_i32, %c0_i32_0, %c0_i32_1 : i32, i32, i32
  }
  func.func @transform_3(%arg0: i32) -> (i32, i32) {
    %c0_i32 = arith.constant 0 : i32
    %c0_i32_0 = arith.constant 0 : i32
    %c0_i32_1 = arith.constant 0 : i32
    return %c0_i32, %c0_i32_0 : i32, i32
  }
}

</mosaic_0001>

<bundles_post_ra>
// kernel: tile.7
= control target key start
LH: loop header
LB: loop body
LE: loop exit
PB: predicated region body
PF: predicated region fallthrough
CT: control target
= control target key end

     0   :  { %s22_s0 = inlined_call_operand.vmem [shape: s32[24], index: 0, kind: input, shape index: {}]   ;;  %s23_s1 = inlined_call_operand.vmem [shape: s32[2,24], index: 1, kind: output, shape index: {}]  }
   0x1   :  { %v4_v0 = vld [vmem:[%s22_s0] ss:$0 sm:$0xff] }
   0x2   :  { %5 = vst [vmem:[%s23_s1] sm:$0x3] %v4_v0 }

// kernel: ne.8
= control target key start
LH: loop header
LB: loop body
LE: loop exit
PB: predicated region body
PF: predicated region fallthrough
CT: control target
= control target key end

     0   :  { %vm7_vm0 = vcmask 195584   ;;  %vm13_vm1 = vcmask 392384   ;;  %s39_s0 = inlined_call_operand.vmem [shape: s32[2,24], index: 0, kind: input, shape index: {}]   ;;  %s40_s1 = inlined_call_operand.vmem [shape: s32[48], index: 1, kind: output, shape index: {}]  }
   0x1   :  { %v4_v0 = vld [vmem:[%s39_s0] sm:$0x3]  ;;  %s22_s0 = smov 24  }
   0x2   :  { %5 = vst [vmem:[#allocation1] sm:$0x3] %v4_v0 }
   0x9   :  { %v10_v1 = vld [vmem:[#allocation1 + $0x1] sm:$0x1]   ;;  %v6_v2 = vld [vmem:[#allocation1] sm:$0x1]  }
   0xa   :  { %11 = vrot.lane.b32.xlu0 %v10_v1, %s22_s0  ;;  %8 = vst.msk [vmem:[#allocation0] sm:$0x1] %vm7_vm0, %v6_v2  }
  0x7c   :  { %v12_v3 = vpop.permute.xlu0 %11  }
  0x7d   :  { %14 = vst.msk [vmem:[#allocation0] sm:$0x1] %vm13_vm1, %v12_v3  }
  0x84   :  { %v18_v4 = vld [vmem:[#allocation0] sm:$0x1] }
  0x85   :  { %20 = vst [vmem:[%s40_s1] sm:$0x1] %v18_v4 }

// kernel: _fused_forward.1
= control target key start
LH: loop header
LB: loop body
LE: loop exit
PB: predicated region body
PF: predicated region fallthrough
CT: control target
= control target key end

     0   :  { %8 = vsyncpa [#allocation3], 0  ;;  %s1107_s12 = smov [#allocation2]   ;;  %s1303_s0 = inlined_call_operand.vmem [shape: bf16[48,128], index: 0, kind: input, shape index: {}]   ;;  %s1304_s1 = inlined_call_operand.vmem [shape: f32[48,48], index: 1, kind: input, shape index: {}]   ;;  %s1305_s2 = inlined_call_operand.hbm [shape: bf16[4,128,128], index: 2, kind: input, shape index: {}]   ;;  %s1306_s3 = inlined_call_operand.vmem [shape: f32[48,128], index: 3, kind: output, shape index: {}]  }
   0x1   :  { %s18_s13 = sshll.u32 %s1107_s12, 4  ;;  %s1083_s16 = scalar_lea.hbm %s1305_s2, 4096  ;;  %s19_s13 = int_to_ptr.vmem [resolvable:$true] %s18_s13 }
   0x2   :  { %p1084_p0 = scmp.ne.s32.totalorder %s1305_s2, %s1083_s16  ;;  %p1087_p1 = scmp.lt.u32.totalorder %s1083_s16, %s1305_s2 }
   0x4   :  { %p1089_p2 = pnand %p1087_p1, %p1084_p0 }
   0x6   :  { %1092 = shalt.err (!%p1089_p2)
}
   0x7   :  { %s1093_s21 = scalar_lea.vmem %s19_s13, 4096  ;;  %p1098_p4 = scmp.lt.s32.totalorder %s19_s13, %s19_s13 }
   0x8   :  { %p1094_p3 = scmp.ne.s32.totalorder %s19_s13, %s1093_s21  ;;  %p1099_p5 = scmp.lt.s32.totalorder %s1093_s21, %s1093_s21 }
   0xa   :  { %p1100_p6 = por %p1099_p5, %p1098_p4 }
   0xc   :  { %p1101_p7 = pnand %p1100_p6, %p1094_p3 }
   0xe   :  { %1104 = shalt.err (!%p1101_p7)
}
   0xf   :  { %s1108_s22 = smov 64   ;;  %s1109_s23 = smov 4  }
  0x10   :  { %24 = dma.hbm_to_vmem [thread:$0]  %s1305_s2, 4096, %s19_s13, [#allocation3], %s1108_s22, %s1108_s22, %s1109_s23  }
  0x11   :  { %1105 = dma.done.wait [#allocation3], 4096  }
  0x12   :  { %1106 = vsyncadd [#allocation3], 4294963200  ;;  %v1110_v0 = vmov 0.0   ;;  %vm1111_vm0 = vmmov 0   ;;  %v1021_v1 = vld [vmem:[#allocation2 + $0x40] sm:$0xff]   ;;  %v1022_v2 = vld [vmem:[#allocation2 + $0x48] sm:$0xff]  }
  0x13   :  { %896 = vmatprep.subr.bf16.mxu1 %v1110_v0  ;;  %868 = vmatprep.subr.bf16.mxu0 %v1110_v0  ;;  %v1023_v3 = vld [vmem:[#allocation2 + $0x50] sm:$0xff]   ;;  %v1027_v4 = vld [vmem:[#allocation2] sm:$0xff]   ;;  %v1029_v5 = vld [vmem:[#allocation2 + $0x8] sm:$0xff]   ;;  %vm507_vm1 = vcmask 392192  }
  0x14   :  { %912 = vmatprep.mubr.msk.bf16.mxu1 %vm1111_vm0, %v1110_v0  ;;  %884 = vmatprep.mubr.msk.bf16.mxu0 %vm1111_vm0, %v1110_v0  ;;  %v1024_v6 = vld [vmem:[#allocation2 + $0x58] sm:$0xff]   ;;  %v1031_v7 = vld [vmem:[#allocation2 + $0x10] sm:$0xff]   ;;  %v1025_v8 = vld [vmem:[#allocation2 + $0x60] sm:$0xff]  }
  0x15   :  { %897 = vmatpush3.bf16.msra.mxu1 %v1021_v1  ;;  %869 = vmatpush3.bf16.msra.mxu0 %v1027_v4  ;;  %v1026_v9 = vld [vmem:[#allocation2 + $0x68] sm:$0xff]   ;;  %v1033_v10 = vld [vmem:[#allocation2 + $0x18] sm:$0xff]   ;;  %v1034_v11 = vld [vmem:[#allocation2 + $0x20] sm:$0xff]  }
  0x16   :  { %898 = vmatprep.subr.bf16.mxu1 %v1110_v0  ;;  %870 = vmatprep.subr.bf16.mxu0 %v1110_v0  ;;  %v1028_v12 = vld [vmem:[#allocation2 + $0x70] sm:$0xff]   ;;  %v1036_v13 = vld [vmem:[#allocation2 + $0x28] sm:$0xff]   ;;  %v1030_v14 = vld [vmem:[#allocation2 + $0x78] sm:$0xff]  }
  0x17   :  { %v1163_v15 = vld [vmem:[%s1303_s0] sm:$0xff]   ;;  %v1037_v16 = vld [vmem:[#allocation2 + $0x30] sm:$0xff]   ;;  %v1039_v17 = vld [vmem:[#allocation2 + $0x38] sm:$0xff]  }
  0x18   :  { %v1176_v18 = vld [vmem:[%s1303_s0 + $0x8] sm:$0xff]   ;;  %v1188_v19 = vld [vmem:[%s1303_s0 + $0x10] sm:$0xff]   ;;  %v1040_v50 = vld [vmem:[#allocation2 + $0x80] sm:$0xff]  }
  0x19   :  { %899 = vmatpush3.bf16.msra.mxu1 %v1022_v2  ;;  %871 = vmatpush3.bf16.msra.mxu0 %v1029_v5  ;;  %v1041_v51 = vld [vmem:[#allocation2 + $0x88] sm:$0xff]   ;;  %v1042_v52 = vld [vmem:[#allocation2 + $0x90] sm:$0xff]   ;;  %v1043_v53 = vld [vmem:[#allocation2 + $0x98] sm:$0xff]  }
  0x1a   :  { %900 = vmatprep.subr.bf16.mxu1 %v1110_v0  ;;  %872 = vmatprep.subr.bf16.mxu0 %v1110_v0  ;;  %v1044_v54 = vld [vmem:[#allocation2 + $0xa0] sm:$0xff]   ;;  %v1045_v55 = vld [vmem:[#allocation2 + $0xa8] sm:$0xff]   ;;  %v1046_v56 = vld [vmem:[#allocation2 + $0xb0] sm:$0xff]  }
  0x1b   :  { %v1047_v57 = vld [vmem:[#allocation2 + $0xb8] sm:$0xff]   ;;  %v35_v58 = vld [vmem:[%s1304_s1] sm:$0xff]  ;;  %v36_v60 = vld [vmem:[%s1304_s1 + $0x8] sm:$0xff] }
  0x1c   :  { %v37_v4 = vld [vmem:[%s1304_s1 + $0x10] sm:$0xff] }
  0x1d   :  { %901 = vmatpush3.bf16.msra.mxu1 %v1023_v3  ;;  %873 = vmatpush3.bf16.msra.mxu0 %v1031_v7  ;;  %v38_v7 = vld [vmem:[%s1304_s1 + $0x18] sm:$0xff] }
  0x1e   :  { %902 = vmatprep.subr.bf16.mxu1 %v1110_v0  ;;  %874 = vmatprep.subr.bf16.mxu0 %v1110_v0 }
  0x21   :  { %903 = vmatpush3.bf16.msra.mxu1 %v1024_v6  ;;  %875 = vmatpush3.bf16.msra.mxu0 %v1033_v10 }
  0x22   :  { %904 = vmatprep.subr.bf16.mxu1 %v1110_v0  ;;  %876 = vmatprep.subr.bf16.mxu0 %v1110_v0 }
  0x25   :  { %905 = vmatpush3.bf16.msra.mxu1 %v1025_v8  ;;  %877 = vmatpush3.bf16.msra.mxu0 %v1034_v11 }
  0x26   :  { %906 = vmatprep.subr.bf16.mxu1 %v1110_v0  ;;  %878 = vmatprep.subr.bf16.mxu0 %v1110_v0 }
  0x29   :  { %907 = vmatpush3.bf16.msra.mxu1 %v1026_v9  ;;  %879 = vmatpush3.bf16.msra.mxu0 %v1036_v13 }
  0x2a   :  { %908 = vmatprep.subr.bf16.mxu1 %v1110_v0  ;;  %880 = vmatprep.subr.bf16.mxu0 %v1110_v0 }
  0x2d   :  { %909 = vmatpush3.bf16.msra.mxu1 %v1028_v12  ;;  %881 = vmatpush3.bf16.msra.mxu0 %v1037_v16 }
  0x2e   :  { %910 = vmatprep.subr.bf16.mxu1 %v1110_v0  ;;  %882 = vmatprep.subr.bf16.mxu0 %v1110_v0 }
  0x31   :  { %911 = vmatpush3.bf16.msra.mxu1 %v1030_v14  ;;  %883 = vmatpush3.bf16.msra.mxu0 %v1039_v17  ;;  %v39_v14 = vld [vmem:[%s1304_s1 + $0x20] sm:$0xff] }
  0x32   :  { %952 = vmatprep.subr.bf16.mxu1 %v1110_v0  ;;  %924 = vmatprep.subr.bf16.mxu0 %v1110_v0 }
  0x34   :  { %913 = vmatmul.mubr.bf16.vlgmr.msra.gmra.mrb[0].mxu1 %v1163_v15  ;;  %885 = vmatmul.mubr.bf16.vlgmr.msra.gmra.mrb[0].mxu0 %v1163_v15 }
  0x35   :  { %916 = vmatprep.mubr.msk.bf16.mxu1 %vm1111_vm0, %v1110_v0  ;;  %888 = vmatprep.mubr.msk.bf16.mxu0 %vm1111_vm0, %v1110_v0 }
  0x36   :  { %925 = vmatpush3.bf16.msra.mxu0 %v1040_v50 }
  0x37   :  { %926 = vmatprep.subr.bf16.mxu0 %v1110_v0 }
  0x3a   :  { %927 = vmatpush3.bf16.msra.mxu0 %v1041_v51 }
  0x3b   :  { %928 = vmatprep.subr.bf16.mxu0 %v1110_v0 }
  0x3c   :  { %917 = vmatmul.mubr.bf16.gmra.mrb[4].mxu1 %v1176_v18  ;;  %889 = vmatmul.mubr.bf16.gmra.mrb[4].mxu0 %v1176_v18 }
  0x3d   :  { %920 = vmatprep.mubr.msk.bf16.mxu1 %vm1111_vm0, %v1110_v0  ;;  %892 = vmatprep.mubr.msk.bf16.mxu0 %vm1111_vm0, %v1110_v0 }
  0x3e   :  { %929 = vmatpush3.bf16.msra.mxu0 %v1042_v52 }
  0x3f   :  { %930 = vmatprep.subr.bf16.mxu0 %v1110_v0 }
  0x42   :  { %931 = vmatpush3.bf16.msra.mxu0 %v1043_v53 }
  0x43   :  { %932 = vmatprep.subr.bf16.mxu0 %v1110_v0 }
  0x44   :  { %921 = vmatmul.mubr.bf16.gmra.mrb[8].mxu1 %v1188_v19  ;;  %893 = vmatmul.mubr.bf16.gmra.mrb[8].mxu0 %v1188_v19 }
  0x45   :  { %958 = vmatprep.mubr.msk.bf16.mxu1 %vm1111_vm0, %v1110_v0  ;;  %940 = vmatprep.mubr.msk.bf16.mxu0 %vm1111_vm0, %v1110_v0 }
  0x46   :  { %933 = vmatpush3.bf16.msra.mxu0 %v1044_v54 }
  0x47   :  { %934 = vmatprep.subr.bf16.mxu0 %v1110_v0 }
  0x4a   :  { %935 = vmatpush3.bf16.msra.mxu0 %v1045_v55 }
  0x4b   :  { %936 = vmatprep.subr.bf16.mxu0 %v1110_v0 }
  0x4e   :  { %937 = vmatpush3.bf16.msra.mxu0 %v1046_v56 }
  0x4f   :  { %938 = vmatprep.subr.bf16.mxu0 %v1110_v0 }
  0x52   :  { %939 = vmatpush3.bf16.msra.mxu0 %v1047_v57 }
  0x53   :  { %988 = vmatprep.subr.bf16.mxu0 %v1110_v0 }
  0x55   :  { %941 = vmatmul.mubr.bf16.vlgmr.msra.gmra.mrb[12].mxu0 %v1163_v15 }
  0x56   :  { %944 = vmatprep.mubr.msk.bf16.mxu0 %vm1111_vm0, %v1110_v0 }
  0x5d   :  { %945 = vmatmul.mubr.bf16.gmra.mrb[16].mxu0 %v1176_v18 }
  0x5e   :  { %948 = vmatprep.mubr.msk.bf16.mxu0 %vm1111_vm0, %v1110_v0 }
  0x65   :  { %949 = vmatmul.mubr.bf16.gmra.mrb[20].mxu0 %v1188_v19 }
  0x66   :  { %1004 = vmatprep.mubr.msk.bf16.mxu0 %vm1111_vm0, %v1110_v0 }
 0x107   :  { %v316_v20 = vpop.f32.mrb[0].mxu1  ;;  %v208_v25 = vpop.f32.mrb[0].mxu0 }
 0x108   :  { %v914_v21 = vpop.f32.mrb[1].mxu1  ;;  %v886_v26 = vpop.f32.mrb[1].mxu0 }
 0x109   :  { %v319_v22 = vpop.f32.mrb[2].mxu1  ;;  %v211_v28 = vpop.f32.mrb[2].mxu0 }
 0x10a   :  { %v339_v23 = vpack.c.bf16 %v319_v22, %v316_v20  ;;  %v915_v24 = vpop.f32.mrb[3].mxu1  ;;  %v231_v30 = vpack.c.bf16 %v211_v28, %v208_v25  ;;  %v887_v31 = vpop.f32.mrb[3].mxu0  ;;  %v40_v20 = vld [vmem:[%s1304_s1 + $0x28] sm:$0xff] }
 0x10c   :  { %953 = vmatpush3.bf16.xpose.msra.mxu1 %v339_v23 }
 0x10d   :  { %954 = vmatprep.subr.bf16.mxu1 %v1110_v0 }
 0x10f   :  { %v324_v27 = vpop.f32.mrb[4].mxu1  ;;  %v216_v35 = vpop.f32.mrb[4].mxu0 }
 0x110   :  { %v918_v29 = vpop.f32.mrb[5].mxu1  ;;  %v890_v36 = vpop.f32.mrb[5].mxu0 }
 0x111   :  { %v327_v32 = vpop.f32.mrb[6].mxu1  ;;  %v219_v38 = vpop.f32.mrb[6].mxu0 }
 0x112   :  { %v340_v33 = vpack.c.bf16 %v327_v32, %v324_v27  ;;  %v919_v34 = vpop.f32.mrb[7].mxu1  ;;  %v232_v40 = vpack.c.bf16 %v219_v38, %v216_v35  ;;  %v891_v41 = vpop.f32.mrb[7].mxu0 }
 0x114   :  { %955 = vmatpush3.bf16.xpose.msra.mxu1 %v340_v33 }
 0x115   :  { %956 = vmatprep.subr.bf16.mxu1 %v1110_v0 }
 0x117   :  { %v332_v37 = vpop.f32.mrb[8].mxu1  ;;  %v224_v45 = vpop.f32.mrb[8].mxu0 }
 0x118   :  { %v922_v39 = vpop.f32.mrb[9].mxu1  ;;  %v894_v46 = vpop.f32.mrb[9].mxu0 }
 0x119   :  { %v335_v42 = vpop.f32.mrb[10].mxu1  ;;  %v227_v47 = vpop.f32.mrb[10].mxu0 }
 0x11a   :  { %v341_v43 = vpack.c.bf16 %v335_v42, %v332_v37  ;;  %v923_v44 = vpop.f32.mrb[11].mxu1  ;;  %v233_v48 = vpack.c.bf16 %v227_v47, %v224_v45  ;;  %v895_v49 = vpop.f32.mrb[11].mxu0 }
 0x11c   :  { %957 = vmatpush3.bf16.xpose.msra.mxu1 %v341_v43 }
 0x11d   :  { %970 = vmatprep.subr.bf16.mxu1 %v1110_v0 }
 0x123   :  { %959 = vmatmul.mubr.bf16.vlgmr.msra.gmra.mrb[12].mxu1 %v231_v30 }
 0x124   :  { %962 = vmatprep.mubr.msk.bf16.mxu1 %vm1111_vm0, %v1110_v0 }
 0x128   :  { %v424_v28 = vpop.f32.mrb[12].mxu0 }
 0x129   :  { %v942_v29 = vpop.f32.mrb[13].mxu0 }
 0x12a   :  { %v427_v30 = vpop.f32.mrb[14].mxu0 }
 0x12b   :  { %963 = vmatmul.mubr.bf16.gmra.mrb[16].mxu1 %v232_v40  ;;  %v447_v31 = vpack.c.bf16 %v427_v30, %v424_v28  ;;  %v943_v32 = vpop.f32.mrb[15].mxu0 }
 0x12c   :  { %966 = vmatprep.mubr.msk.bf16.mxu1 %vm1111_vm0, %v1110_v0 }
 0x12d   :  { %971 = vmatpush3.bf16.msra.mxu1 %v447_v31 }
 0x12e   :  { %972 = vmatprep.subr.bf16.mxu1 %v1110_v0 }
 0x130   :  { %v432_v35 = vpop.f32.mrb[16].mxu0 }
 0x131   :  { %v946_v36 = vpop.f32.mrb[17].mxu0 }
 0x132   :  { %v435_v38 = vpop.f32.mrb[18].mxu0 }
 0x133   :  { %967 = vmatmul.mubr.bf16.gmra.mrb[20].mxu1 %v233_v48  ;;  %v448_v40 = vpack.c.bf16 %v435_v38, %v432_v35  ;;  %v947_v41 = vpop.f32.mrb[19].mxu0 }
 0x134   :  { %976 = vmatprep.mubr.msk.bf16.mxu1 %vm1111_vm0, %v1110_v0  ;;  %v1055_v41 = vld [vmem:[#allocation2 + $0xf8] sm:$0xff]  }
 0x135   :  { %973 = vmatpush3.bf16.msra.mxu1 %v448_v40 }
 0x136   :  { %974 = vmatprep.subr.bf16.mxu1 %v1110_v0 }
 0x1f6   :  { %v484_v59 = vpop.f32.mrb[12].mxu1 }
 0x1f7   :  { %v485_v61 = vadd.f32 %v484_v59, %v35_v58  ;;  %v960_v62 = vpop.f32.mrb[13].mxu1 }
 0x1f8   :  { %v487_v63 = vpop.f32.mrb[14].mxu1 }
 0x1f9   :  { %v488_v1 = vadd.f32 %v487_v63, %v36_v60  ;;  %v961_v2 = vpop.f32.mrb[15].mxu1  ;;  %v508_v3 = vsel %vm507_vm1, %v485_v61, -inf }
 0x1fa   :  { %509 = vmax.xlane.f32.xlu0 %v508_v3 }
 0x1fb   :  { %v511_v5 = vsel %vm507_vm1, %v488_v1, -inf }
 0x1fe   :  { %512 = vmax.xlane.f32.xlu0 %v511_v5  ;;  %v492_v6 = vpop.f32.mrb[16].mxu1  ;;  %v440_v5 = vpop.f32.mrb[20].mxu0 }
 0x1ff   :  { %v493_v8 = vadd.f32 %v492_v6, %v37_v4  ;;  %v964_v9 = vpop.f32.mrb[17].mxu1  ;;  %v950_v6 = vpop.f32.mrb[21].mxu0 }
 0x200   :  { %v495_v10 = vpop.f32.mrb[18].mxu1 }
 0x201   :  { %v496_v11 = vadd.f32 %v495_v10, %v38_v7  ;;  %v965_v12 = vpop.f32.mrb[19].mxu1  ;;  %v514_v13 = vsel %vm507_vm1, %v493_v8, -inf  ;;  %v443_v7 = vpop.f32.mrb[22].mxu0  ;;  %v1048_v10 = vld [vmem:[#allocation2 + $0xc0] sm:$0xff]  }
 0x202   :  { %515 = vmax.xlane.f32.xlu1 %v514_v13  ;;  %v449_v9 = vpack.c.bf16 %v443_v7, %v440_v5  ;;  %989 = vmatpush3.bf16.msra.mxu0 %v1048_v10  ;;  %v1050_v12 = vld [vmem:[#allocation2 + $0xd0] sm:$0xff]   ;;  %v1051_v13 = vld [vmem:[#allocation2 + $0xd8] sm:$0xff]  }
 0x203   :  { %v517_v16 = vsel %vm507_vm1, %v496_v11, -inf  ;;  %990 = vmatprep.subr.bf16.mxu0 %v1110_v0 }
 0x204   :  { %975 = vmatpush3.bf16.msra.mxu1 %v449_v9  ;;  %v648_v9 = vunpack.c.h.bf16 %v1188_v19 }
 0x206   :  { %518 = vmax.xlane.f32.xlu1 %v517_v16  ;;  %v500_v17 = vpop.f32.mrb[20].mxu1  ;;  %v1053_v16 = vld [vmem:[#allocation2 + $0xe8] sm:$0xff]  }
 0x207   :  { %v501_v21 = vadd.f32 %v500_v17, %v39_v14  ;;  %v968_v22 = vpop.f32.mrb[21].mxu1  ;;  %v1052_v14 = vld [vmem:[#allocation2 + $0xe0] sm:$0xff]   ;;  %v1054_v17 = vld [vmem:[#allocation2 + $0xf0] sm:$0xff]  }
 0x208   :  { %v503_v23 = vpop.f32.mrb[22].mxu1 }
 0x209   :  { %v504_v24 = vadd.f32 %v503_v23, %v40_v20  ;;  %v969_v25 = vpop.f32.mrb[23].mxu1  ;;  %v520_v26 = vsel %vm507_vm1, %v501_v21, -inf }
 0x20a   :  { %521 = vmax.xlane.f32.xlu0 %v520_v26 }
 0x20b   :  { %v523_v27 = vsel %vm507_vm1, %v504_v24, -inf }
 0x20c   :  { %524 = vmax.xlane.f32.xlu1 %v523_v27 }
 0x287   :  { %v510_v33 = vpop.xlane.xlu0 %509 }
 0x288   :  { %v526_v34 = vsub.f32 %v485_v61, %v510_v33 }
 0x28a   :  { %v532_v37 = vmul.f32 1.442695, %v526_v34 }
 0x28b   :  { %v513_v39 = vpop.xlane.xlu0 %512 }
 0x28c   :  { %1059 = vpow2.f32 %v532_v37  ;;  %v527_v42 = vsub.f32 %v488_v1, %v513_v39 }
 0x28e   :  { %v534_v43 = vmul.f32 1.442695, %v527_v42 }
 0x28f   :  { %v516_v44 = vpop.xlane.xlu1 %515 }
 0x290   :  { %1061 = vpow2.f32 %v534_v43  ;;  %v528_v45 = vsub.f32 %v493_v8, %v516_v44  ;;  %v951_v8 = vpop.f32.mrb[23].mxu0 }
 0x291   :  { %v647_v8 = vunpack.c.l.bf16 %v1188_v19 }
 0x292   :  { %v536_v46 = vmul.f32 1.442695, %v528_v45 }
 0x293   :  { %v519_v47 = vpop.xlane.xlu1 %518 }
 0x294   :  { %1063 = vpow2.f32 %v536_v46  ;;  %v529_v48 = vsub.f32 %v496_v11, %v519_v47  ;;  %v1049_v11 = vld [vmem:[#allocation2 + $0xc8] sm:$0xff]  }
 0x295   :  { %991 = vmatpush3.bf16.msra.mxu0 %v1049_v11 }
 0x296   :  { %v1251_v49 = vpop.eup %1059  ;;  %v538_v50 = vmul.f32 1.442695, %v529_v48  ;;  %992 = vmatprep.subr.bf16.mxu0 %v1110_v0 }
 0x297   :  { %v522_v51 = vpop.xlane.xlu0 %521  ;;  %v544_v52 = vsel %vm507_vm1, %v1251_v49, 0.0 }
 0x298   :  { %1065 = vpow2.f32 %v538_v50  ;;  %v530_v53 = vsub.f32 %v501_v21, %v522_v51  ;;  %545 = vadd.xlane.f32.xlu0 %v544_v52 }
 0x299   :  { %v525_v54 = vpop.xlane.xlu1 %524  ;;  %993 = vmatpush3.bf16.msra.mxu0 %v1050_v12 }
 0x29a   :  { %v1062_v55 = vpop.eup %1061  ;;  %v540_v56 = vmul.f32 1.442695, %v530_v53  ;;  %v531_v57 = vsub.f32 %v504_v24, %v525_v54  ;;  %994 = vmatprep.subr.bf16.mxu0 %v1110_v0 }
 0x29b   :  { %v547_v58 = vsel %vm507_vm1, %v1062_v55, 0.0 }
 0x29c   :  { %1067 = vpow2.f32 %v540_v56  ;;  %v542_v59 = vmul.f32 1.442695, %v531_v57  ;;  %548 = vadd.xlane.f32.xlu1 %v547_v58  ;;  %v643_v57 = vunpack.c.l.bf16 %v1163_v15  ;;  %v644_v58 = vunpack.c.h.bf16 %v1163_v15 }
 0x29d   :  { %995 = vmatpush3.bf16.msra.mxu0 %v1051_v13 }
 0x29e   :  { %v1064_v60 = vpop.eup %1063  ;;  %1069 = vpow2.f32 %v542_v59  ;;  %996 = vmatprep.subr.bf16.mxu0 %v1110_v0 }
 0x29f   :  { %v550_v61 = vsel %vm507_vm1, %v1064_v60, 0.0 }
 0x2a0   :  { %551 = vadd.xlane.f32.xlu0 %v550_v61 }
 0x2a1   :  { %997 = vmatpush3.bf16.msra.mxu0 %v1052_v14 }
 0x2a2   :  { %v1066_v62 = vpop.eup %1065  ;;  %998 = vmatprep.subr.bf16.mxu0 %v1110_v0 }
 0x2a3   :  { %v553_v63 = vsel %vm507_vm1, %v1066_v62, 0.0 }
 0x2a4   :  { %554 = vadd.xlane.f32.xlu1 %v553_v63 }
 0x2a5   :  { %999 = vmatpush3.bf16.msra.mxu0 %v1053_v16 }
 0x2a6   :  { %v1068_v1 = vpop.eup %1067  ;;  %1000 = vmatprep.subr.bf16.mxu0 %v1110_v0 }
 0x2a7   :  { %v556_v2 = vsel %vm507_vm1, %v1068_v1, 0.0 }
 0x2a8   :  { %v1070_v3 = vpop.eup %1069  ;;  %557 = vadd.xlane.f32.xlu0 %v556_v2  ;;  %v646_v2 = vunpack.c.h.bf16 %v1176_v18 }
 0x2a9   :  { %v559_v4 = vsel %vm507_vm1, %v1070_v3, 0.0  ;;  %1001 = vmatpush3.bf16.msra.mxu0 %v1054_v17 }
 0x2aa   :  { %560 = vadd.xlane.f32.xlu1 %v559_v4  ;;  %1002 = vmatprep.subr.bf16.mxu0 %v1110_v0 }
 0x2ad   :  { %1003 = vmatpush3.bf16.msra.mxu0 %v1055_v41 }
 0x325   :  { %v546_v20 = vpop.xlane.xlu0 %545 }
 0x326   :  { %1071 = vrcp.f32 %v546_v20 }
 0x329   :  { %v549_v21 = vpop.xlane.xlu1 %548 }
 0x32a   :  { %1073 = vrcp.f32 %v549_v21 }
 0x32d   :  { %v552_v22 = vpop.xlane.xlu0 %551 }
 0x32e   :  { %1075 = vrcp.f32 %v552_v22 }
 0x330   :  { %v1072_v24 = vpop.eup %1071 }
 0x331   :  { %v555_v23 = vpop.xlane.xlu1 %554  ;;  %v568_v26 = vmul.f32 %v1072_v24, %v1251_v49 }
 0x332   :  { %1077 = vrcp.f32 %v555_v23 }
 0x334   :  { %v1074_v25 = vpop.eup %1073 }
 0x335   :  { %v569_v27 = vmul.f32 %v1074_v25, %v1062_v55  ;;  %v558_v28 = vpop.xlane.xlu0 %557 }
 0x336   :  { %1079 = vrcp.f32 %v558_v28 }
 0x337   :  { %v574_v29 = vpack.c.bf16 %v569_v27, %v568_v26  ;;  %v561_v30 = vpop.xlane.xlu1 %560 }
 0x338   :  { %1081 = vrcp.f32 %v561_v30  ;;  %v1076_v31 = vpop.eup %1075 }
 0x339   :  { %977 = vmatmul.mubr.msk.bf16.vlgmr.msra.gmra.mrb[24].mxu1 %vm507_vm1, %v574_v29  ;;  %v570_v33 = vmul.f32 %v1076_v31, %v1064_v60 }
 0x33a   :  { %980 = vmatprep.mubr.msk.bf16.mxu1 %vm1111_vm0, %v1110_v0 }
 0x33c   :  { %v1078_v32 = vpop.eup %1077 }
 0x33d   :  { %v571_v34 = vmul.f32 %v1078_v32, %v1066_v62 }
 0x33f   :  { %v575_v35 = vpack.c.bf16 %v571_v34, %v570_v33 }
 0x340   :  { %v1080_v36 = vpop.eup %1079 }
 0x341   :  { %981 = vmatmul.mubr.msk.bf16.gmra.mrb[28].mxu1 %vm507_vm1, %v575_v35  ;;  %v572_v39 = vmul.f32 %v1080_v36, %v1068_v1  ;;  %v645_v1 = vunpack.c.l.bf16 %v1176_v18 }
 0x342   :  { %v1082_v37 = vpop.eup %1081  ;;  %984 = vmatprep.mubr.msk.bf16.mxu1 %vm1111_vm0, %v1110_v0 }
 0x343   :  { %v573_v38 = vmul.f32 %v1082_v37, %v1070_v3 }
 0x345   :  { %v576_v40 = vpack.c.bf16 %v573_v38, %v572_v39 }
 0x349   :  { %985 = vmatmul.mubr.msk.bf16.gmra.mrb[32].mxu1 %vm507_vm1, %v576_v40 }
 0x40c   :  { %v620_v42 = vpop.f32.mrb[24].mxu1 }
 0x40d   :  { %v978_v43 = vpop.f32.mrb[25].mxu1 }
 0x40e   :  { %v623_v44 = vpop.f32.mrb[26].mxu1 }
 0x40f   :  { %v649_v45 = vpack.c.bf16 %v623_v44, %v620_v42  ;;  %v979_v46 = vpop.f32.mrb[27].mxu1 }
 0x411   :  { %1005 = vmatmul.mubr.bf16.vlgmr.msra.gmra.mrb[24].mxu0 %v649_v45 }
 0x412   :  { %1008 = vmatprep.mubr.msk.bf16.mxu0 %vm1111_vm0, %v1110_v0 }
 0x414   :  { %v628_v47 = vpop.f32.mrb[28].mxu1 }
 0x415   :  { %v982_v48 = vpop.f32.mrb[29].mxu1 }
 0x416   :  { %v631_v49 = vpop.f32.mrb[30].mxu1 }
 0x417   :  { %v650_v50 = vpack.c.bf16 %v631_v49, %v628_v47  ;;  %v983_v51 = vpop.f32.mrb[31].mxu1 }
 0x419   :  { %1009 = vmatmul.mubr.bf16.gmra.mrb[28].mxu0 %v650_v50 }
 0x41a   :  { %1012 = vmatprep.mubr.msk.bf16.mxu0 %vm1111_vm0, %v1110_v0 }
 0x41c   :  { %v636_v52 = vpop.f32.mrb[32].mxu1 }
 0x41d   :  { %v986_v53 = vpop.f32.mrb[33].mxu1 }
 0x41e   :  { %v639_v54 = vpop.f32.mrb[34].mxu1 }
 0x41f   :  { %v651_v55 = vpack.c.bf16 %v639_v54, %v636_v52  ;;  %v987_v56 = vpop.f32.mrb[35].mxu1 }
 0x421   :  { %1013 = vmatmul.mubr.bf16.gmra.mrb[32].mxu0 %v651_v55 }
 0x4e4   :  { %v734_v59 = vpop.f32.mrb[24].mxu0 }
 0x4e5   :  { %v757_v60 = vadd.f32 %v734_v59, %v643_v57  ;;  %v1006_v61 = vpop.f32.mrb[25].mxu0 }
 0x4e6   :  { %v737_v62 = vpop.f32.mrb[26].mxu0 }
 0x4e7   :  { %763 = vst [vmem:[%s1306_s3] sm:$0xff] %v757_v60  ;;  %v758_v63 = vadd.f32 %v737_v62, %v644_v58  ;;  %v1007_v0 = vpop.f32.mrb[27].mxu0 }
 0x4e9   :  { %764 = vst [vmem:[%s1306_s3 + $0x8] sm:$0xff] %v758_v63 }
 0x4ec   :  { %v742_v3 = vpop.f32.mrb[28].mxu0 }
 0x4ed   :  { %v759_v15 = vadd.f32 %v742_v3, %v645_v1  ;;  %v1010_v4 = vpop.f32.mrb[29].mxu0 }
 0x4ee   :  { %v745_v5 = vpop.f32.mrb[30].mxu0 }
 0x4ef   :  { %765 = vst [vmem:[%s1306_s3 + $0x10] sm:$0xff] %v759_v15  ;;  %v760_v6 = vadd.f32 %v745_v5, %v646_v2  ;;  %v1011_v7 = vpop.f32.mrb[31].mxu0 }
 0x4f1   :  { %766 = vst [vmem:[%s1306_s3 + $0x18] sm:$0xff] %v760_v6 }
 0x4f4   :  { %v750_v10 = vpop.f32.mrb[32].mxu0 }
 0x4f5   :  { %v761_v18 = vadd.f32 %v750_v10, %v647_v8  ;;  %v1014_v11 = vpop.f32.mrb[33].mxu0 }
 0x4f6   :  { %v753_v12 = vpop.f32.mrb[34].mxu0 }
 0x4f7   :  { %767 = vst [vmem:[%s1306_s3 + $0x20] sm:$0xff] %v761_v18  ;;  %v762_v13 = vadd.f32 %v753_v12, %v648_v9  ;;  %v1015_v14 = vpop.f32.mrb[35].mxu0 }
 0x4f9   :  { %768 = vst [vmem:[%s1306_s3 + $0x28] sm:$0xff] %v762_v13 }
 0x4fa   :  { %773 = vsyncpa [#allocation3], 1 }

</bundles_post_ra>
